<compile_context>
chip_gen: v6e
topology: v6e:2x2x1
jax: 0.10.0
libtpu: 0.0.40
codegen_flags: <defaults>
</compile_context>

<pallas_src>
import jax
import jax.numpy as jnp
from jax.experimental import pallas as pl
from jax.experimental.pallas import tpu as pltpu


def _perm_kernel_tile(x_ref, o_ref):
    # x_ref: (TS, TH) tile of one batch element (batch axis squeezed out);
    # o_ref: (TH, TS).  2-D transpose maps onto the XLU vxpose path, hidden
    # under the HBM DMA on v5e/v6e.
    # TODO(synk): on v7x (~3.2 TB/s HBM per TC but still 2 XLUs) dump bundles
    # and, if the vector-extended slot saturates, offload part of the transpose
    # to the MXU (identity-matmul / trans_a form) or shrink the tile further.
    o_ref[...] = x_ref[...].T


def _perm_kernel_batched(x_ref, o_ref):
    # x_ref: (Bblk, S, H) slab; o_ref: (Bblk, H, S).  Small-slab path: pack
    # several batch elements per grid step.
    o_ref[...] = jnp.transpose(x_ref[...], (0, 2, 1))


def _chip_budgets():
    """Return (per_tile_budget_bytes, vmem_limit_bytes) per chip generation.

    Measured HBM-roofline data plateaus at 512-1024 element tiles, so ~4 MiB
    tiles already saturate bandwidth on every generation; only the scoped VMEM
    limit differs (v7x has 64 MiB physical VMEM per TensorCore).
    """
    is_small_vmem = True  # conservative default: assume v7x-class 64 MiB VMEM
    try:
        info = pltpu.get_tpu_info()
        ver = getattr(info, "chip_version", None) or getattr(info, "version", None)
        name = str(ver).lower() if ver is not None else ""
        if name:
            if "7" in name:
                is_small_vmem = True
            elif ("5" in name) or ("6" in name):
                is_small_vmem = False
        else:
            vmem = getattr(info, "vmem_capacity_bytes", None)
            if vmem is not None:
                is_small_vmem = int(vmem) <= (64 << 20)
    except Exception:
        pass
    per_tile_budget = 4 << 20                       # ~1024x1024 f32 tile
    vmem_limit = (48 << 20) if is_small_vmem else (64 << 20)
    return per_tile_budget, vmem_limit


def _align_down_128(n: int) -> int:
    return (n // 128) * 128


def _tile_dim(full: int, cap: int) -> int:
    """Either the whole axis (full-dim exception to the (8,128) rule) or a
    multiple of 128 no larger than cap."""
    if full <= cap:
        return full
    return max(128, _align_down_128(min(cap, full)))


def _pick_tiles(S: int, H: int, max_elems: int):
    """Tile sizes for the large-slab path (S*H > max_elems)."""
    # Prefer keeping the full H axis so input DMA rows stay contiguous, as long
    # as that still allows ts >= 512 (long rows get closer to the HBM roofline).
    ts_if_full_h = _align_down_128(max_elems // max(H, 1))
    if ts_if_full_h >= 512:
        return _tile_dim(S, ts_if_full_h), H
    # Otherwise roughly square, both axes >= 512 where the shape allows it.
    side = max(512, _align_down_128(int(max_elems ** 0.5)))
    th = _tile_dim(H, side)
    ts_cap = max(512, _align_down_128(max_elems // max(th, 1)))
    ts = _tile_dim(S, ts_cap)
    return ts, th


def perm(x: jax.Array, *, _force_tiles=None) -> jax.Array:
    """Equivalent of torch `x.permute(0, 2, 1)` for a rank-3 array (B, S, H)."""
    assert x.ndim == 3, "perm expects a rank-3 input (B, S, H)"
    B, S, H = x.shape
    itemsize = jnp.dtype(x.dtype).itemsize

    per_tile_budget, vmem_limit = _chip_budgets()
    max_elems = max(1, per_tile_budget // itemsize)
    slab_elems = S * H

    out_shape = jax.ShapeDtypeStruct((B, H, S), x.dtype)

    def cparams(dim_sem):
        return pltpu.CompilerParams(
            dimension_semantics=dim_sem, vmem_limit_bytes=vmem_limit
        )

    # ---------------- Small-slab path: pack batch elements per block --------
    if _force_tiles is None and slab_elems <= max_elems:
        bblk = int(max(1, min(B, max_elems // max(slab_elems, 1))))
        grid = (pl.cdiv(B, bblk),)
        return pl.pallas_call(
            _perm_kernel_batched,
            out_shape=out_shape,
            grid_spec=pltpu.PrefetchScalarGridSpec(
                num_scalar_prefetch=0,
                grid=grid,
                in_specs=[pl.BlockSpec((bblk, S, H), lambda b: (b, 0, 0))],
                out_specs=pl.BlockSpec((bblk, H, S), lambda b: (b, 0, 0)),
            ),
            compiler_params=cparams(("parallel",)),
        )(x)

    # ---------------- Large-slab path: tiled 2-D transpose ------------------
    if _force_tiles is not None:
        ts, th = _force_tiles
    else:
        ts, th = _pick_tiles(S, H, max_elems)

    gs, gh = pl.cdiv(S, ts), pl.cdiv(H, th)

    # Order grid axes largest-first so megacore sharding of the leading
    # "parallel" axis is balanced on v7x even when B is 1 or odd.
    # TODO(synk): consider pltpu.CORE_PARALLEL on the leading axis for explicit
    # cross-core sharding once bundle dumps confirm the split.
    extents = (B, gs, gh)                 # logical axes: 0 = batch, 1 = S, 2 = H
    order = sorted(range(3), key=lambda a: (-extents[a], a))
    pos = {logical: p for p, logical in enumerate(order)}
    grid = tuple(extents[a] for a in order)

    def in_map(*g):
        return (g[pos[0]], g[pos[1]], g[pos[2]])

    def out_map(*g):
        return (g[pos[0]], g[pos[2]], g[pos[1]])

    out_spec = pl.BlockSpec((None, th, ts), out_map)
    dim_sem = ("parallel",) * 3

    def call(deep_input_pipeline: bool):
        if deep_input_pipeline:
            # 3-deep input buffering: 3*tile + 2*tile ~ 20 MiB, well inside the
            # scoped VMEM limit; hides DMA issue latency when the XLU transpose
            # finishes before the next load.
            in_spec = pl.BlockSpec(
                (None, ts, th), in_map, pipeline_mode=pl.Buffered(3)
            )
        else:
            in_spec = pl.BlockSpec((None, ts, th), in_map)
        return pl.pallas_call(
            _perm_kernel_tile,
            out_shape=out_shape,
            grid_spec=pltpu.PrefetchScalarGridSpec(
                num_scalar_prefetch=0,
                grid=grid,
                in_specs=[in_spec],
                out_specs=out_spec,
            ),
            compiler_params=cparams(dim_sem),
        )(x)

    try:
        return call(True)
    except Exception:
        # pipeline_mode / Buffered unsupported on this jax version: default
        # double buffering is within a few % on this mem-bound kernel.
        return call(False)


if __name__ == "__main__":
    key = jax.random.PRNGKey(0)
    k0, k1, k2 = jax.random.split(key, 3)

    # Small shape implied by the module's forward: (batch, seq, hidden).
    B, S, H = 2, 8, 32
    x = jax.random.normal(k0, (B, S, H), dtype=jnp.float32)
    out = jax.block_until_ready(perm(x))
    ref = jnp.transpose(x, (0, 2, 1))
    assert out.shape == (B, H, S)
    assert out.dtype == x.dtype
    assert jnp.array_equal(out, ref), "Pallas perm mismatch (small-slab path)"

    # Exercise the tiled (large-shape) path on a small aligned problem; grid is
    # reordered largest-axis-first (H tiles lead here since B=1).
    x2 = jax.random.normal(k1, (1, 256, 384), dtype=jnp.float32)
    out2 = jax.block_until_ready(perm(x2, _force_tiles=(128, 128)))
    ref2 = jnp.transpose(x2, (0, 2, 1))
    assert jnp.array_equal(out2, ref2), "Pallas perm mismatch (tiled path)"

    # Tiled path with a partial edge tile (S=200) and B>1 to exercise masking
    # and the grid-axis reordering with a batch axis present.
    x3 = jax.random.normal(k2, (2, 200, 384), dtype=jnp.float32)
    out3 = jax.block_until_ready(perm(x3, _force_tiles=(128, 128)))
    ref3 = jnp.transpose(x3, (0, 2, 1))
    assert jnp.array_equal(out3, ref3), "Pallas perm mismatch (tiled edge path)"

    print("KERNEL_OK")
</pallas_src>

<mosaic_0001>
module attributes {stable_mosaic.version = 11 : i64} {
  func.func @_perm_kernel_batched(%arg0: i32, %arg1: memref<2x8x32xf32, #tpu.memory_space<vmem>>, %arg2: memref<2x32x8xf32, #tpu.memory_space<vmem>>) attributes {dimension_semantics = [#tpu.dimension_semantics<parallel>], iteration_bounds = array<i64: 1>, scalar_prefetch = 0 : i64, scratch_operands = 0 : i64, tpu.core_type = #tpu.core_type<tc>, window_params = [{transform_indices = @transform_0, window_bounds = array<i64: 2, 8, 32>}, {transform_indices = @transform_1, window_bounds = array<i64: 2, 32, 8>}]} {
    %c0 = arith.constant 0 : index
    %c0_0 = arith.constant 0 : index
    %c0_1 = arith.constant 0 : index
    %0 = vector.load %arg1[%c0, %c0_0, %c0_1] : memref<2x8x32xf32, #tpu.memory_space<vmem>>, vector<2x8x32xf32>
    %1 = tpu.transpose %0, [0, 2, 1] : vector<2x8x32xf32> -> vector<2x32x8xf32>
    %c0_2 = arith.constant 0 : index
    %c0_3 = arith.constant 0 : index
    %c0_4 = arith.constant 0 : index
    %2 = vector.load %arg2[%c0_2, %c0_3, %c0_4] : memref<2x32x8xf32, #tpu.memory_space<vmem>>, vector<2x32x8xf32>
    tpu.vector_store %arg2[%c0_2, %c0_3, %c0_4], %1 {strides = array<i32>} : memref<2x32x8xf32, #tpu.memory_space<vmem>>, vector<2x32x8xf32>,
    return
  }
  func.func @transform_0(%arg0: i32) -> (i32, i32, i32) {
    %c0_i32 = arith.constant 0 : i32
    %c0_i32_0 = arith.constant 0 : i32
    %c0_i32_1 = arith.constant 0 : i32
    return %arg0, %c0_i32, %c0_i32_0 : i32, i32, i32
  }
  func.func @transform_1(%arg0: i32) -> (i32, i32, i32) {
    %c0_i32 = arith.constant 0 : i32
    %c0_i32_0 = arith.constant 0 : i32
    %c0_i32_1 = arith.constant 0 : i32
    return %arg0, %c0_i32, %c0_i32_0 : i32, i32, i32
  }
}

</mosaic_0001>

<bundles_post_ra>
// kernel: tpu_custom_call.1
= control target key start
LH: loop header
LB: loop body
LE: loop exit
PB: predicated region body
PF: predicated region fallthrough
CT: control target
= control target key end

     0   :  { %6 = vsyncpa [#allocation3], 0  ;;  %s128_s6 = smov [#allocation2]   ;;  %s176_s0 = inlined_call_operand.hbm [shape: f32[2,8,32], index: 0, kind: input, shape index: {}]   ;;  %s177_s1 = inlined_call_operand.vmem [shape: f32[2,32,8], index: 1, kind: output, shape index: {}]  }
   0x1   :  { %s12_s7 = sshll.u32 %s128_s6, 4  ;;  %s13_s7 = int_to_ptr.vmem [resolvable:$true] %s12_s7 }
   0x2   :  { %s114_s8 = scalar_lea.vmem %s13_s7, 256  ;;  %p119_p1 = scmp.lt.s32.totalorder %s13_s7, %s13_s7 }
   0x3   :  { %p115_p0 = scmp.ne.s32.totalorder %s13_s7, %s114_s8  ;;  %p120_p2 = scmp.lt.s32.totalorder %s114_s8, %s114_s8 }
   0x5   :  { %p121_p3 = por %p120_p2, %p119_p1 }
   0x7   :  { %p122_p4 = pnand %p121_p3, %p115_p0 }
   0x9   :  { %125 = shalt.err (!%p122_p4)
}
   0xa   :  { %s129_s9 = smov 128   ;;  %s130_s10 = smov 8  }
   0xb   :  { %18 = dma.hbm_to_vmem [thread:$0]  %s176_s0, 256, %s13_s7, [#allocation3], %s129_s9, %s129_s9, %s130_s10  }
   0xc   :  { %126 = dma.done.wait [#allocation3], 256  }
   0xd   :  { %127 = vsyncadd [#allocation3], 4294967040  ;;  %v22_v0 = vld [vmem:[#allocation2] sm:$0xff]  ;;  %v23_v1 = vld [vmem:[#allocation2 + $0x8] sm:$0xff]  ;;  %vm88_vm0 = vcmask 64512  }
   0xe   :  { %24 = vxpose.xlu0.b32.start.end [1/1] (short) (narrow) %v22_v0, 32 }
  0x1b   :  { %56 = vxpose.xlu0.b32.start.end [1/1] (short) (narrow) %v23_v1, 32 }
  0x8a   :  { %v40_v2 = vpop.trf.xlu0 }
  0x8b   :  { %89 = vst.msk [vmem:[%s177_s1] sm:$0xff] %vm88_vm0, %v40_v2 }
  0x8e   :  { %v41_v3 = vpop.trf.xlu0 }
  0x8f   :  { %90 = vst.msk [vmem:[%s177_s1 + $0x8] sm:$0xff] %vm88_vm0, %v41_v3 }
  0x92   :  { %v42_v4 = vpop.trf.xlu0 }
  0x93   :  { %91 = vst.msk [vmem:[%s177_s1 + $0x10] sm:$0xff] %vm88_vm0, %v42_v4 }
  0x96   :  { %v43_v5 = vpop.trf.xlu0 }
  0x97   :  { %92 = vst.msk [vmem:[%s177_s1 + $0x18] sm:$0xff] %vm88_vm0, %v43_v5 }
  0x9a   :  { %v72_v6 = vpop.trf.xlu0 }
  0x9b   :  { %93 = vst.msk [vmem:[%s177_s1 + $0x20] sm:$0xff] %vm88_vm0, %v72_v6 }
  0x9e   :  { %v73_v7 = vpop.trf.xlu0 }
  0x9f   :  { %94 = vst.msk [vmem:[%s177_s1 + $0x28] sm:$0xff] %vm88_vm0, %v73_v7 }
  0xa2   :  { %v74_v8 = vpop.trf.xlu0 }
  0xa3   :  { %95 = vst.msk [vmem:[%s177_s1 + $0x30] sm:$0xff] %vm88_vm0, %v74_v8 }
  0xa6   :  { %v75_v9 = vpop.trf.xlu0 }
  0xa7   :  { %96 = vst.msk [vmem:[%s177_s1 + $0x38] sm:$0xff] %vm88_vm0, %v75_v9 }
  0xa8   :  { %101 = vsyncpa [#allocation3], 1 }

</bundles_post_ra>
